<compile_context>
chip_gen: v6e
topology: v6e:2x2x1
jax: 0.10.0
libtpu: 0.0.40
codegen_flags: <defaults>
</compile_context>

<pallas_src>
import functools

import jax
import jax.numpy as jnp
from jax import lax
from jax.experimental import pallas as pl
from jax.experimental.pallas import tpu as pltpu

SMOOTH = 1e-5


def _dice_partial_kernel(pred_ref, label_ref, inter_ref, card_ref, *, groups, sub):
    # pred_ref  : [1, C, s_tile, 128]  (input dtype; math stays in that dtype)
    # label_ref : [1, 1, s_tile, 128]  int8/int32  (-1 or 255 = ignore/pad)
    # inter_ref : [1, C, sub, 128] f32 lane+sublane-resident running sum of soft*onehot
    # card_ref  : [1, C, sub, 128] f32 running sum of soft + onehot
    t = pl.program_id(2)

    @pl.when(t == 0)
    def _():
        inter_ref[...] = jnp.zeros_like(inter_ref)
        card_ref[...] = jnp.zeros_like(card_ref)

    p = pred_ref[...]
    cdt = p.dtype if p.dtype == jnp.bfloat16 else jnp.float32
    p = p.astype(cdt)                                  # [1, C, S, 128]
    lab = label_ref[...].astype(jnp.int32)             # [1, 1, S, 128]
    C = p.shape[1]

    # Channel softmax over the outer C axis (pure VALU/EUP; no cross-lane work).
    m = jnp.max(p, axis=1, keepdims=True)              # [1, 1, S, 128]
    e = jnp.exp(p - m)                                  # [1, C, S, 128]
    d = jnp.sum(e, axis=1, keepdims=True).astype(jnp.float32)
    inv0 = pl.reciprocal(d, approx=True)                # EUP slot
    inv = (inv0 * (2.0 - d * inv0)).astype(cdt)         # one Newton step (keeps 1e-5)
    soft = e * inv                                       # [1, C, S, 128]

    # On-the-fly one-hot via compare (255 / -1 never match 0..C-1).
    cls = lax.broadcasted_iota(jnp.int32, (1, C, 1, 1), 1)
    hit = lab == cls                                     # [1, C, S, 128] bool

    inter_c = jnp.where(hit, soft, 0.0)                  # soft * onehot
    card_c = jnp.where(hit, soft + 1.0, soft)            # soft + onehot (no hit_f temp)

    # Vreg-aligned partial reduction: collapse only groups of 8 sublanes; the
    # [sub, 128] footprint stays resident -> pure VALU adds, unmasked stores.
    if groups == 1:
        inter_part = inter_c.astype(jnp.float32)
        card_part = card_c.astype(jnp.float32)
    else:
        inter_part = jnp.sum(inter_c.reshape(1, C, groups, sub, 128),
                             axis=2, dtype=jnp.float32)
        card_part = jnp.sum(card_c.reshape(1, C, groups, sub, 128),
                            axis=2, dtype=jnp.float32)

    inter_ref[...] += inter_part
    card_ref[...] += card_part


def _vmem_cap_bytes():
    try:
        return int(pltpu.get_tpu_info().vmem_capacity_bytes)
    except Exception:
        return 128 << 20


def _choose_s_tile(C, s_total, pred_bytes, s_tile=None, budget=2 << 20):
    """Spatial tile in 128-lane blocks.  Whole image if it fits a ~2 MiB per-buffer
    budget; otherwise the largest divisor of s_total (prefer multiples of 32, then 8)
    so no padding copy is needed; only as a last resort a non-dividing tile."""
    if s_tile is None:
        if C * s_total * 128 * pred_bytes <= budget:
            return s_total
        max_tile = max(8, budget // (C * 128 * pred_bytes))
        for align in (32, 8):
            best = 0
            d = align
            while d <= min(max_tile, s_total):
                if s_total % d == 0:
                    best = d
                d += align
            if best:
                return best
        return max(8, (max_tile // 8) * 8)      # fallback: pad S (rare)
    if s_tile >= s_total:
        return s_total
    return max(8, (int(s_tile) // 8) * 8)


def multiclass_dice_loss(pred, label, smooth=SMOOTH, s_tile=None):
    """pred: [N, C, H, W] float (f32 or bf16), label: [N, H, W] int (255 = ignore)."""
    N, C, H, W = pred.shape
    HW = H * W
    pred_bytes = jnp.dtype(pred.dtype).itemsize

    s_total = -(-HW // 128)                              # ceil(HW / 128)
    s_tile = _choose_s_tile(C, s_total, pred_bytes, s_tile)
    s_pad = -(-s_total // s_tile) * s_tile
    hw_pad = s_pad * 128
    pad = hw_pad - HW

    # 8-bit labels when the block layout is friendly (full-extent or 32-sublane tiles).
    use_i8 = (C <= 127) and (s_tile == s_total or s_tile % 32 == 0)
    ldt = jnp.int8 if use_i8 else jnp.int32
    label_bytes = jnp.dtype(ldt).itemsize

    pred_f = pred.reshape(N, C, HW)                      # keep input dtype (bf16 ok)
    lab = label.reshape(N, 1, HW)
    if use_i8:
        lab = jnp.where(lab == 255, -1, lab).astype(jnp.int8)
    else:
        lab = lab.astype(jnp.int32)

    if pad:
        # Pad logits with zeros: their softmax is exactly 1/C per channel, so the
        # only contamination is pad/C on the cardinality, removed in the glue below.
        pred_f = jnp.pad(pred_f, ((0, 0), (0, 0), (0, pad)))
        lab = jnp.pad(lab, ((0, 0), (0, 0), (0, pad)), constant_values=-1)

    pred_f = pred_f.reshape(N, C, s_pad, 128)
    lab = lab.reshape(N, 1, s_pad, 128)

    num_tiles = s_pad // s_tile
    n_split = 2 if (num_tiles >= 2 and num_tiles % 2 == 0) else 1
    tiles_per_split = num_tiles // n_split
    sub = 8 if s_tile % 8 == 0 else s_tile
    groups = s_tile // sub

    def in_map(n, h, t):
        return (n, 0, h * tiles_per_split + t, 0)

    def out_map(n, h, t):
        return (n * n_split + h, 0, 0, 0)

    pred_tile_b = C * s_tile * 128 * pred_bytes
    label_tile_b = s_tile * 128 * label_bytes
    acc_tile_b = 2 * C * sub * 128 * 4
    interm_b = 6 * C * s_tile * 128 * 4                  # f32 elementwise temporaries
    vmem_cap = _vmem_cap_bytes()
    vmem_limit = 2 * (pred_tile_b + label_tile_b) + 2 * acc_tile_b + interm_b + (2 << 20)
    vmem_limit = int(min(min(40 << 20, vmem_cap // 2), max(16 << 20, vmem_limit)))

    kernel = functools.partial(_dice_partial_kernel, groups=groups, sub=sub)
    inter_p, card_p = pl.pallas_call(
        kernel,
        out_shape=(
            jax.ShapeDtypeStruct((N * n_split, C, sub, 128), jnp.float32),
            jax.ShapeDtypeStruct((N * n_split, C, sub, 128), jnp.float32),
        ),
        grid=(N, n_split, tiles_per_split),
        in_specs=[
            pl.BlockSpec((1, C, s_tile, 128), in_map),
            pl.BlockSpec((1, 1, s_tile, 128), in_map),
        ],
        out_specs=(
            pl.BlockSpec((1, C, sub, 128), out_map),
            pl.BlockSpec((1, C, sub, 128), out_map),
        ),
        compiler_params=pltpu.CompilerParams(
            dimension_semantics=("parallel", "parallel", "arbitrary"),
            vmem_limit_bytes=vmem_limit,
        ),
        cost_estimate=pl.CostEstimate(
            flops=int(12 * N * C * hw_pad),
            transcendentals=int(N * C * hw_pad),
            bytes_accessed=int(pred_f.size * pred_bytes + lab.size * label_bytes
                               + 2 * N * n_split * C * sub * 128 * 4),
        ),
    )(pred_f, lab)

    # Tiny glue: split/sublane/lane reduce, pad correction, dice, batch/class means.
    inter_p = inter_p.reshape(N, n_split, C, sub, 128)
    card_p = card_p.reshape(N, n_split, C, sub, 128)
    inter = jnp.sum(inter_p, axis=(1, 3, 4))             # [N, C]
    card = jnp.sum(card_p, axis=(1, 3, 4))               # [N, C]
    if pad:
        card = card - jnp.float32(pad) / jnp.float32(C)  # zero-logit pad pixels
    dice = (2.0 * inter + smooth) / (card + smooth)
    return jnp.mean(1.0 - jnp.mean(dice, axis=0))


def _reference_loss(pred, label, smooth=SMOOTH):
    C = pred.shape[1]
    lab = jnp.where(label == 255, C, label)
    oh = jax.nn.one_hot(lab, C + 1, dtype=jnp.float32)    # [N, H, W, C+1]
    oh = jnp.transpose(oh, (0, 3, 1, 2))[:, :-1]           # [N, C, H, W]
    soft = jax.nn.softmax(pred.astype(jnp.float32), axis=1)
    inter = jnp.sum(soft * oh, axis=(2, 3))
    card = jnp.sum(soft, axis=(2, 3)) + jnp.sum(oh, axis=(2, 3))
    dice = (2.0 * inter + smooth) / (card + smooth)
    return jnp.mean(1.0 - jnp.mean(dice, axis=0))


def _make_inputs(key, N, C, H, W):
    k_pred, k_lab, k_ign = jax.random.split(key, 3)
    pred = jax.random.normal(k_pred, (N, C, H, W), dtype=jnp.float32)
    label = jax.random.randint(k_lab, (N, H, W), 0, C, dtype=jnp.int32)
    ignore = jax.random.uniform(k_ign, (N, H, W)) < 0.1
    return pred, jnp.where(ignore, jnp.int32(255), label)


if __name__ == "__main__":
    key = jax.random.PRNGKey(0)
    k1, k2, k3, k4, k5 = jax.random.split(key, 5)

    # 1) basic: HW a multiple of 128, single spatial tile, int8 labels.
    pred, label = _make_inputs(k1, 2, 4, 16, 16)
    out = jax.block_until_ready(multiclass_dice_loss(pred, label))
    ref = jax.block_until_ready(_reference_loss(pred, label))
    assert jnp.allclose(out, ref, atol=1e-5, rtol=1e-5), (out, ref)

    # 2) HW not a multiple of 128 -> zero-pad tail corrected in the glue (no in-kernel mask).
    pred, label = _make_inputs(k2, 2, 4, 10, 10)
    out = jax.block_until_ready(multiclass_dice_loss(pred, label))
    ref = jax.block_until_ready(_reference_loss(pred, label))
    assert jnp.allclose(out, ref, atol=1e-5, rtol=1e-5), (out, ref)

    # 3) multi-tile accumulator + 2-way "parallel" split path (force s_tile=8 -> 4 tiles).
    pred, label = _make_inputs(k3, 2, 4, 64, 64)
    out = jax.block_until_ready(multiclass_dice_loss(pred, label, s_tile=8))
    ref = jax.block_until_ready(_reference_loss(pred, label))
    assert jnp.allclose(out, ref, atol=1e-5, rtol=1e-5), (out, ref)

    # 4) odd class count + pad correction with non-power-of-two C.
    pred, label = _make_inputs(k4, 2, 3, 36, 36)
    out = jax.block_until_ready(multiclass_dice_loss(pred, label))
    ref = jax.block_until_ready(_reference_loss(pred, label))
    assert jnp.allclose(out, ref, atol=1e-5, rtol=1e-5), (out, ref)

    # 5) bf16 pred: bf16 elementwise math, f32 accumulation, grouped (8,128) partials.
    pred, label = _make_inputs(k5, 2, 4, 64, 64)
    predb = pred.astype(jnp.bfloat16)
    out = jax.block_until_ready(multiclass_dice_loss(predb, label))
    ref = jax.block_until_ready(_reference_loss(predb.astype(jnp.float32), label))
    assert jnp.allclose(out, ref, atol=2e-2, rtol=2e-2), (out, ref)

    print("KERNEL_OK")
</pallas_src>

<mosaic_0001>
module attributes {stable_mosaic.version = 11 : i64} {
  func.func @_dice_partial_kernel(%arg0: i32, %arg1: i32, %arg2: i32, %arg3: memref<1x4x2x128xf32, #tpu.memory_space<vmem>>, %arg4: memref<1x1x2x128xi8, #tpu.memory_space<vmem>>, %arg5: memref<1x4x2x128xf32, #tpu.memory_space<vmem>>, %arg6: memref<1x4x2x128xf32, #tpu.memory_space<vmem>>) attributes {dimension_semantics = [#tpu.dimension_semantics<parallel>, #tpu.dimension_semantics<parallel>, #tpu.dimension_semantics<arbitrary>], iteration_bounds = array<i64: 2, 1, 1>, scalar_prefetch = 0 : i64, scratch_operands = 0 : i64, tpu.core_type = #tpu.core_type<tc>, window_params = [{transform_indices = @transform_0, window_bounds = array<i64: 1, 4, 2, 128>}, {transform_indices = @transform_1, window_bounds = array<i64: 1, 1, 2, 128>}, {transform_indices = @transform_2, window_bounds = array<i64: 1, 4, 2, 128>}, {transform_indices = @transform_3, window_bounds = array<i64: 1, 4, 2, 128>}]} {
    %c0_i32 = arith.constant 0 : i32
    %0 = arith.cmpi eq, %arg2, %c0_i32 : i32
    %1 = arith.extui %0 : i1 to i32
    %c0_i32_0 = arith.constant 0 : i32
    %2 = arith.cmpi ne, %1, %c0_i32_0 : i32
    scf.if %2 {
      %cst_28 = arith.constant 0.000000e+00 : f32
      %35 = vector.broadcast %cst_28 : f32 to vector<1x4x2x128xf32>
      %c0_29 = arith.constant 0 : index
      %c0_30 = arith.constant 0 : index
      %c0_31 = arith.constant 0 : index
      %c0_32 = arith.constant 0 : index
      %36 = vector.load %arg5[%c0_29, %c0_30, %c0_31, %c0_32] : memref<1x4x2x128xf32, #tpu.memory_space<vmem>>, vector<1x4x2x128xf32>
      tpu.vector_store %arg5[%c0_29, %c0_30, %c0_31, %c0_32], %35 {strides = array<i32>} : memref<1x4x2x128xf32, #tpu.memory_space<vmem>>, vector<1x4x2x128xf32>,
      %cst_33 = arith.constant 0.000000e+00 : f32
      %37 = vector.broadcast %cst_33 : f32 to vector<1x4x2x128xf32>
      %c0_34 = arith.constant 0 : index
      %c0_35 = arith.constant 0 : index
      %c0_36 = arith.constant 0 : index
      %c0_37 = arith.constant 0 : index
      %38 = vector.load %arg6[%c0_34, %c0_35, %c0_36, %c0_37] : memref<1x4x2x128xf32, #tpu.memory_space<vmem>>, vector<1x4x2x128xf32>
      tpu.vector_store %arg6[%c0_34, %c0_35, %c0_36, %c0_37], %37 {strides = array<i32>} : memref<1x4x2x128xf32, #tpu.memory_space<vmem>>, vector<1x4x2x128xf32>,
    } else {
    }
    %c0 = arith.constant 0 : index
    %c0_1 = arith.constant 0 : index
    %c0_2 = arith.constant 0 : index
    %c0_3 = arith.constant 0 : index
    %3 = vector.load %arg3[%c0, %c0_1, %c0_2, %c0_3] : memref<1x4x2x128xf32, #tpu.memory_space<vmem>>, vector<1x4x2x128xf32>
    %c0_4 = arith.constant 0 : index
    %c0_5 = arith.constant 0 : index
    %c0_6 = arith.constant 0 : index
    %c0_7 = arith.constant 0 : index
    %4 = vector.load %arg4[%c0_4, %c0_5, %c0_6, %c0_7] : memref<1x1x2x128xi8, #tpu.memory_space<vmem>>, vector<1x1x2x128xi8>
    %5 = arith.extsi %4 : vector<1x1x2x128xi8> to vector<1x1x2x128xi32>
    %cst = arith.constant dense<0xFF800000> : vector<1x2x128xf32>
    %6 = vector.multi_reduction <maximumf>, %3, %cst [1] : vector<1x4x2x128xf32> to vector<1x2x128xf32>
    %7 = vector.shape_cast %6 : vector<1x2x128xf32> to vector<1x1x2x128xf32>
    %8 = vector.broadcast %7 : vector<1x1x2x128xf32> to vector<1x4x2x128xf32>
    %9 = arith.subf %3, %8 : vector<1x4x2x128xf32>
    %10 = math.exp %9 : vector<1x4x2x128xf32>
    %cst_8 = arith.constant dense<0.000000e+00> : vector<1x2x128xf32>
    %11 = vector.multi_reduction <add>, %10, %cst_8 [1] : vector<1x4x2x128xf32> to vector<1x2x128xf32>
    %12 = vector.shape_cast %11 : vector<1x2x128xf32> to vector<1x1x2x128xf32>
    %13 = tpu.reciprocal %12 {approx = true} : vector<1x1x2x128xf32> -> vector<1x1x2x128xf32>
    %14 = arith.mulf %12, %13 : vector<1x1x2x128xf32>
    %cst_9 = arith.constant 2.000000e+00 : f32
    %15 = vector.broadcast %cst_9 : f32 to vector<1x1x2x128xf32>
    %16 = arith.subf %15, %14 : vector<1x1x2x128xf32>
    %17 = arith.mulf %13, %16 : vector<1x1x2x128xf32>
    %18 = vector.broadcast %17 : vector<1x1x2x128xf32> to vector<1x4x2x128xf32>
    %19 = arith.mulf %10, %18 : vector<1x4x2x128xf32>
    %20 = tpu.iota {dimensions = array<i32: 1>} : vector<1x4x1x1xi32>
    %21 = vector.broadcast %5 : vector<1x1x2x128xi32> to vector<1x4x2x128xi32>
    %22 = vector.broadcast %20 : vector<1x4x1x1xi32> to vector<1x4x2x128xi32>
    %23 = arith.cmpi eq, %21, %22 : vector<1x4x2x128xi32>
    %cst_10 = arith.constant 0.000000e+00 : f32
    %24 = vector.broadcast %cst_10 : f32 to vector<1x4x2x128xf32>
    %25 = arith.select %23, %19, %24 : vector<1x4x2x128xi1>, vector<1x4x2x128xf32>
    %cst_11 = arith.constant 1.000000e+00 : f32
    %26 = vector.broadcast %cst_11 : f32 to vector<1x4x2x128xf32>
    %27 = arith.addf %19, %26 : vector<1x4x2x128xf32>
    %28 = arith.select %23, %27, %19 : vector<1x4x2x128xi1>, vector<1x4x2x128xf32>
    %c0_12 = arith.constant 0 : index
    %c0_13 = arith.constant 0 : index
    %c0_14 = arith.constant 0 : index
    %c0_15 = arith.constant 0 : index
    %29 = vector.load %arg5[%c0_12, %c0_13, %c0_14, %c0_15] : memref<1x4x2x128xf32, #tpu.memory_space<vmem>>, vector<1x4x2x128xf32>
    %30 = arith.addf %29, %25 : vector<1x4x2x128xf32>
    %c0_16 = arith.constant 0 : index
    %c0_17 = arith.constant 0 : index
    %c0_18 = arith.constant 0 : index
    %c0_19 = arith.constant 0 : index
    %31 = vector.load %arg5[%c0_16, %c0_17, %c0_18, %c0_19] : memref<1x4x2x128xf32, #tpu.memory_space<vmem>>, vector<1x4x2x128xf32>
    tpu.vector_store %arg5[%c0_16, %c0_17, %c0_18, %c0_19], %30 {strides = array<i32>} : memref<1x4x2x128xf32, #tpu.memory_space<vmem>>, vector<1x4x2x128xf32>,
    %c0_20 = arith.constant 0 : index
    %c0_21 = arith.constant 0 : index
    %c0_22 = arith.constant 0 : index
    %c0_23 = arith.constant 0 : index
    %32 = vector.load %arg6[%c0_20, %c0_21, %c0_22, %c0_23] : memref<1x4x2x128xf32, #tpu.memory_space<vmem>>, vector<1x4x2x128xf32>
    %33 = arith.addf %32, %28 : vector<1x4x2x128xf32>
    %c0_24 = arith.constant 0 : index
    %c0_25 = arith.constant 0 : index
    %c0_26 = arith.constant 0 : index
    %c0_27 = arith.constant 0 : index
    %34 = vector.load %arg6[%c0_24, %c0_25, %c0_26, %c0_27] : memref<1x4x2x128xf32, #tpu.memory_space<vmem>>, vector<1x4x2x128xf32>
    tpu.vector_store %arg6[%c0_24, %c0_25, %c0_26, %c0_27], %33 {strides = array<i32>} : memref<1x4x2x128xf32, #tpu.memory_space<vmem>>, vector<1x4x2x128xf32>,
    return
  }
  func.func @transform_0(%arg0: i32, %arg1: i32, %arg2: i32) -> (i32, i32, i32, i32) {
    %c1_i32 = arith.constant 1 : i32
    %0 = arith.muli %arg1, %c1_i32 : i32
    %1 = arith.addi %0, %arg2 : i32
    %c0_i32 = arith.constant 0 : i32
    %c0_i32_0 = arith.constant 0 : i32
    %c0_i32_1 = arith.constant 0 : i32
    return %arg0, %c0_i32, %1, %c0_i32_0 : i32, i32, i32, i32
  }
  func.func @transform_1(%arg0: i32, %arg1: i32, %arg2: i32) -> (i32, i32, i32, i32) {
    %c1_i32 = arith.constant 1 : i32
    %0 = arith.muli %arg1, %c1_i32 : i32
    %1 = arith.addi %0, %arg2 : i32
    %c0_i32 = arith.constant 0 : i32
    %c0_i32_0 = arith.constant 0 : i32
    %c0_i32_1 = arith.constant 0 : i32
    return %arg0, %c0_i32, %1, %c0_i32_0 : i32, i32, i32, i32
  }
  func.func @transform_2(%arg0: i32, %arg1: i32, %arg2: i32) -> (i32, i32, i32, i32) {
    %c1_i32 = arith.constant 1 : i32
    %0 = arith.muli %arg0, %c1_i32 : i32
    %1 = arith.addi %0, %arg1 : i32
    %c0_i32 = arith.constant 0 : i32
    %c0_i32_0 = arith.constant 0 : i32
    %c0_i32_1 = arith.constant 0 : i32
    %c0_i32_2 = arith.constant 0 : i32
    return %1, %c0_i32, %c0_i32_0, %c0_i32_1 : i32, i32, i32, i32
  }
  func.func @transform_3(%arg0: i32, %arg1: i32, %arg2: i32) -> (i32, i32, i32, i32) {
    %c1_i32 = arith.constant 1 : i32
    %0 = arith.muli %arg0, %c1_i32 : i32
    %1 = arith.addi %0, %arg1 : i32
    %c0_i32 = arith.constant 0 : i32
    %c0_i32_0 = arith.constant 0 : i32
    %c0_i32_1 = arith.constant 0 : i32
    %c0_i32_2 = arith.constant 0 : i32
    return %1, %c0_i32, %c0_i32_0, %c0_i32_1 : i32, i32, i32, i32
  }
}

</mosaic_0001>

<bundles_post_ra>
// kernel: tpu_custom_call.1
= control target key start
LH: loop header
LB: loop body
LE: loop exit
PB: predicated region body
PF: predicated region fallthrough
CT: control target
= control target key end

     0   :  { %9 = vsyncpa [#allocation3], 0  ;;  %s1121_s0 = inlined_call_operand.hbm [shape: f32[2,4,2,128], index: 0, kind: input, shape index: {}]   ;;  %s1122_s1 = inlined_call_operand.hbm [shape: s8[2,1,2,128], index: 1, kind: input, shape index: {}]   ;;  %s1123_s2 = inlined_call_operand.hbm [shape: f32[2,4,2,128], index: 2, kind: output, shape index: {0}]   ;;  %s1124_s3 = inlined_call_operand.hbm [shape: f32[2,4,2,128], index: 3, kind: output, shape index: {1}]  }
   0x1   :  { %11 = vsyncpa [#allocation3 + $0x1], 0 }
   0x2   :  { %12 = vsyncpa [#allocation6], 0 }
   0x3   :  { %14 = vsyncpa [#allocation6 + $0x1], 0 }
   0x4   :  { %15 = vsyncpa [#allocation4], 0 }
   0x5   :  { %17 = vsyncpa [#allocation4 + $0x1], 0 }
   0x6   :  { %18 = vsyncpa [#allocation9], 0 }
   0x7   :  { %20 = vsyncpa [#allocation9 + $0x1], 0  ;;  %s857_s12 = smov 0   ;;  %s859_s13 = smov 0  }
   0x8   :  { %s861_s14 = smov 0   ;;  %s863_s15 = smov 0  }
   0x9   :  { %s865_s16 = smov 0   ;;  %s867_s17 = smov 0  }
   0xa LB: > { %s546_s18 = sadd.s32 4294967295, %s826_s17   ;;  %s547_s19 = sadd.s32 4294967294, %s826_s17   ;;  %s826_s17 = sphi %s867_s17, %s26_s17   ;;  %s822_s16 = sphi %s865_s16, %s1135_s16   ;;  %s818_s15 = sphi %s863_s15, %s1134_s15   ;;  %s814_s14 = sphi %s861_s14, %s1133_s14   ;;  %s810_s13 = sphi %s859_s13, %s1132_s13   ;;  %s806_s12 = sphi %s857_s12, %s1131_s12  }
   0xb   : > { %s45_s20 = sadd.s32 1, %s822_s16  ;;  %s56_s21 = sadd.s32 1, %s814_s14 }
   0xc   : > { %p47_p0 = scmp.ge.s32.totalorder %s45_s20, 2  ;;  %p63_p1 = scmp.ne.s32.totalorder %s814_s14, %s810_s13 }
   0xd   : > { %p64_p2 = scmp.eq.s32.totalorder %s826_s17, 0  ;;  %p69_p3 = scmp.ne.s32.totalorder %s810_s13, %s806_s12 }
   0xe   : > { %s1137_s20 = smov (%p47_p0, %s45_s20), 0  ;;  %p70_p5 = scmp.eq.s32.totalorder %s546_s18, 0 }
   0xf   : > { %p898_p4 = por %p64_p2, %p63_p1  ;;  %s51_s23 = ssub.s32 %s822_s16, %s1137_s20 }
  0x10   : > { %p125_p6 = scmp.eq.s32.totalorder %s546_s18, 1  ;;  %p54_p7 = scmp.eq.s32.totalorder %s51_s23, 0 }
  0x11   : > { %p904_p8 = por %p70_p5, %p69_p3  ;;  %p131_p10 = scmp.eq.s32.totalorder %s547_s19, 1 }
  0x12   : > { %p908_p9 = por %p125_p6, %p63_p1  ;;  %p549_p12 = scmp.ge.s32.totalorder %s826_s17, 2 }
  0x13   : > { %s913_s26 = scalar_select %p54_p7, %s814_s14, %s56_s21  }
  0x14   : > { %p915_p11 = por %p131_p10, %p69_p3  ;;  %p591_p13 = scmp.lt.s32.totalorder %s826_s17, 2 }
  0x15   : > { %s922_s28 = sand.u32 1, %s814_s14   ;;  %s566_s30 = sshll.u32 %s822_s16, 7 }
  0x16   : > { %s550_s29 = sshll.u32 %s922_s28, 3  ;;  %s191_s6 = scalar_lea.hbm %s1121_s0, %s566_s30 }
  0x17   : > { %s183_s7 = scalar_lea.vmem [#allocation2], %s550_s29  ;;  %p931_p0 = pnand %p591_p13, %p898_p4 }
  0x18   : > { %s192_s8 = sshll.u32 %s183_s7, 4  ;;  %p554_p1 = scmp.ge.s32.totalorder %s826_s17, 1  ;;  %s193_s8 = int_to_ptr.vmem [resolvable:$true] %s192_s8 }
  0x19   : > { %s180_s10 = scalar_lea.sflag [#allocation3], %s922_s28  ;;  %p658_p2 = pneg %p931_p0 }
  0x1a   : > { %s669_s11 = scalar_lea.vmem %s193_s8, 128  ;;  %s828_s18 = smov [#allocation2]  }
  0x1b   : > { %p670_p3 = scmp.ne.s32.totalorder %s193_s8, %s669_s11  ;;  %s674_s19 = sshll.u32 %s828_s18, 4  ;;  %s675_s19 = int_to_ptr.vmem [resolvable:$false] %s674_s19 }
  0x1c   : > { %s676_s21 = scalar_lea.vmem %s675_s19, 256  ;;  %p677_p4 = scmp.lt.s32.totalorder %s193_s8, %s675_s19 }
  0x1d   : > { %p672_p5 = pnand %p670_p3, %p658_p2  ;;  %p678_p7 = scmp.lt.s32.totalorder %s676_s21, %s669_s11 }
  0x1f   : > { %p673_p6 = pneg %p672_p5  ;;  %p679_p10 = por %p678_p7, %p677_p4 }
  0x21   : > { %p680_p13 = pnand %p679_p10, %p673_p6 }
  0x23   : > { %683 = shalt.err (!%p680_p13)
}
  0x24   : > { %s829_s22 = smov 32   ;;  %s830_s23 = smov 2  }
  0x25   : > { %580 = dma.hbm_to_vmem [thread:$0]  (!%p931_p0), %s191_s6, 128, %s193_s8, %s180_s10, %s829_s22, %s829_s22, %s830_s23  }
  0x26   : > { %p219_p3 = scmp.lt.s32.totalorder %s826_s17, 3  ;;  %s553_s29 = sshll.u32 %s822_s16, 4 }
  0x27   : > { %s212_s7 = scalar_lea.hbm %s1122_s1, %s553_s29  ;;  %s205_s11 = scalar_lea.vmem [#allocation5], %s922_s28 }
  0x28   : > { %p948_p5 = pnand %p554_p1, %p219_p3  ;;  %s214_s18 = sshll.u32 %s205_s11, 4  ;;  %s215_s18 = int_to_ptr.vmem [resolvable:$true] %s214_s18 }
  0x29   : > { %s203_s19 = scalar_lea.sflag [#allocation6], %s922_s28  ;;  %s697_s21 = scalar_lea.vmem %s215_s18, 16 }
  0x2a   : > { %p698_p6 = scmp.ne.s32.totalorder %s215_s18, %s697_s21  ;;  %s831_s6 = smov [#allocation5]  }
  0x2b   : > { %s702_s8 = sshll.u32 %s831_s6, 4  ;;  %s703_s8 = int_to_ptr.vmem [resolvable:$false] %s702_s8 }
  0x2c   : > { %p700_p4 = pnand %p698_p6, %p658_p2  ;;  %s704_s10 = scalar_lea.vmem %s703_s8, 32 }
  0x2d   : > { %p705_p1 = scmp.lt.s32.totalorder %s215_s18, %s703_s8  ;;  %p706_p10 = scmp.lt.s32.totalorder %s704_s10, %s697_s21 }
  0x2e   : > { %p701_p7 = pneg %p700_p4 }
  0x2f   : > { %p707_p13 = por %p706_p10, %p705_p1 }
  0x31   : > { %p708_p3 = pnand %p707_p13, %p701_p7 }
  0x33   : > { %711 = shalt.err (!%p708_p3)
}
  0x34   : > { %583 = dma.hbm_to_vmem [thread:$0]  (!%p931_p0), %s212_s7, 16, %s215_s18, %s203_s19  }
  0x35   : > { %223 = sbr.rel (%p948_p5) target bundleno = 160 (0xa0), region = 28  ;;  %s965_s28 = sand.u32 (!%p948_p5), 1, %s810_s13  }
  0x36   : > { %s555_s22 = sshll.u32 (!%p948_p5), %s965_s28, 3  ;;  %s226_s23 = scalar_lea.sflag (!%p948_p5), [#allocation3], %s965_s28 }
  0x37   : > { %s229_s29 = scalar_lea.vmem (!%p948_p5), [#allocation2], %s555_s22 }
  0x3a   : > { %789 = dma.done.wait (%p904_p8), %s226_s23, 128  }
  0x3b   : > { %791 = vsyncadd (%p904_p8), %s226_s23, 4294967168  ;;  %s235_s9 = scalar_lea.sflag [#allocation6], %s965_s28  ;;  %s237_s30 = scalar_lea.vmem [#allocation5], %s965_s28 }
  0x3c   : > { %793 = dma.done.wait (%p904_p8), %s235_s9, 16  }
  0x3d   : > { %795 = vsyncadd (%p904_p8), %s235_s9, 4294967280  ;;  %s979_s4 = scalar_lea.vmem [#allocation7], %s555_s22  ;;  %v832_v0 = vmov 0.0   ;;  %s985_s5 = scalar_lea.vmem [#allocation8], %s555_s22  ;;  %vm291_vm0 = vcmask 1041408  }
  0x3e   : > { %277 = vst [vmem:[%s979_s4] sm:$0x3] %v832_v0  ;;  %278 = vst [vmem:[%s979_s4 + $0x2] sm:$0x3] %v832_v0  ;;  %v285_v1 = vld [vmem:[%s229_s29] sm:$0x3]  ;;  %s567_s24 = sshll.u32 %s818_s15, 7 }
  0x3f   : > { %279 = vst [vmem:[%s979_s4 + $0x4] sm:$0x3] %v832_v0  ;;  %280 = vst [vmem:[%s979_s4 + $0x6] sm:$0x3] %v832_v0  ;;  %v286_v2 = vld [vmem:[%s229_s29 + $0x2] sm:$0x3]  ;;  %s1020_s21 = scalar_lea.hbm %s1123_s2, %s567_s24 }
  0x40   : > { %281 = vst [vmem:[%s985_s5] sm:$0x3] %v832_v0  ;;  %282 = vst [vmem:[%s985_s5 + $0x2] sm:$0x3] %v832_v0  ;;  %v287_v3 = vld [vmem:[%s229_s29 + $0x4] sm:$0x3]  ;;  %v292_v5 = vsel %vm291_vm0, %v285_v1, -inf }
  0x41   : > { %283 = vst [vmem:[%s985_s5 + $0x4] sm:$0x3] %v832_v0  ;;  %284 = vst [vmem:[%s985_s5 + $0x6] sm:$0x3] %v832_v0  ;;  %v288_v4 = vld [vmem:[%s229_s29 + $0x6] sm:$0x3] }
  0x42   : > { %v293_v6 = vsel %vm291_vm0, %v286_v2, -inf  ;;  %v294_v7 = vsel %vm291_vm0, %v287_v3, -inf  ;;  %v295_v8 = vsel %vm291_vm0, %v288_v4, -inf  ;;  %v289_v31 = vld [vmem:[%s237_s30] sm:$0x1]  ;;  %s386_s7 = sshll.u32 %s979_s4, 4  ;;  %s1022_s7 = int_to_ptr.vmem [resolvable:$true] %s386_s7 }
  0x43   : > { %v296_v9 = vmax.f32 %v292_v5, %v293_v6  ;;  %v297_v10 = vmax.f32 %v294_v7, %v295_v8  ;;  %v290_v34 = vunpack.c.0.s8 %v289_v31  ;;  %s403_s11 = sshll.u32 %s985_s5, 4  ;;  %s367_s6 = scalar_lea.sflag [#allocation4], %s965_s28  ;;  %s1068_s11 = int_to_ptr.vmem [resolvable:$true] %s403_s11 }
  0x44   : > { %s712_s8 = scalar_lea.vmem %s1022_s7, 128  ;;  %s833_s10 = smov [#allocation7]  }
  0x45   : > { %v298_v11 = vmax.f32 %v296_v9, %v297_v10  ;;  %vm326_vm1 = vcmp.eq.s32.totalorder %v290_v34, 0  ;;  %v342_v37 = vld [vmem:[%s979_s4] sm:$0x3]  ;;  %vm327_vm2 = vcmp.eq.s32.totalorder %v290_v34, 1  ;;  %vm328_vm3 = vcmp.eq.s32.totalorder %v290_v34, 2  ;;  %p713_p8 = scmp.ne.s32.totalorder %s1022_s7, %s712_s8  ;;  %s716_s22 = sshll.u32 %s833_s10, 4  ;;  %s717_s22 = int_to_ptr.vmem [resolvable:$false] %s716_s22 }
  0x46   : > { %vm329_vm4 = vcmp.eq.s32.totalorder %v290_v34, 3  ;;  %v343_v40 = vld [vmem:[%s979_s4 + $0x2] sm:$0x3]  ;;  %v344_v42 = vld [vmem:[%s979_s4 + $0x4] sm:$0x3]  ;;  %s718_s23 = scalar_lea.vmem %s717_s22, 256  ;;  %p719_p5 = scmp.lt.s32.totalorder %s1022_s7, %s717_s22 }
  0x47   : > { %v299_v12 = vsub.f32 %v285_v1, %v298_v11  ;;  %v300_v13 = vsub.f32 %v286_v2, %v298_v11  ;;  %v301_v14 = vsub.f32 %v287_v3, %v298_v11  ;;  %v302_v15 = vsub.f32 %v288_v4, %v298_v11  ;;  %v345_v44 = vld [vmem:[%s979_s4 + $0x6] sm:$0x3]  ;;  %v354_v53 = vld [vmem:[%s985_s5] sm:$0x3]  ;;  %v355_v54 = vld [vmem:[%s985_s5 + $0x2] sm:$0x3]  ;;  %p714_p0 = pnand %p713_p8, %p908_p9  ;;  %p720_p6 = scmp.lt.s32.totalorder %s718_s23, %s712_s8 }
  0x48   : > { %v356_v55 = vld [vmem:[%s985_s5 + $0x4] sm:$0x3]  ;;  %v357_v60 = vld [vmem:[%s985_s5 + $0x6] sm:$0x3] }
  0x49   : > { %v303_v16 = vmul.f32 1.442695, %v299_v12  ;;  %v305_v17 = vmul.f32 1.442695, %v300_v13  ;;  %v307_v18 = vmul.f32 1.442695, %v301_v14  ;;  %p715_p2 = pneg %p714_p0  ;;  %p721_p4 = por %p720_p6, %p719_p5 }
  0x4a   : > { %v309_v19 = vmul.f32 1.442695, %v302_v15 }
  0x4b   : > { %646 = vpow2.f32 %v303_v16  ;;  %p722_p7 = pnand %p721_p4, %p715_p2 }
  0x4c   : > { %648 = vpow2.f32 %v305_v17 }
  0x4d   : > { %650 = vpow2.f32 %v307_v18 }
  0x4e   : > { %652 = vpow2.f32 %v309_v19 }
  0x58   : > { %v647_v20 = vpop.eup %646 }
  0x59   : > { %v649_v21 = vpop.eup %648  ;;  %v311_v22 = vsel %vm291_vm0, %v647_v20, 0.0 }
  0x5a   : > { %v651_v23 = vpop.eup %650  ;;  %v312_v24 = vsel %vm291_vm0, %v649_v21, 0.0 }
  0x5b   : > { %v653_v25 = vpop.eup %652  ;;  %v313_v26 = vadd.f32 %v312_v24, %v311_v22  ;;  %v314_v27 = vsel %vm291_vm0, %v651_v23, 0.0 }
  0x5c   : > { %v316_v28 = vsel %vm291_vm0, %v653_v25, 0.0 }
  0x5d   : > { %v315_v29 = vadd.f32 %v314_v27, %v313_v26 }
  0x5f   : > { %v317_v30 = vadd.f32 %v316_v28, %v315_v29 }
  0x61   : > { %654 = vrcp.f32 %v317_v30 }
  0x6e   : > { %v655_v32 = vpop.eup %654 }
  0x6f   : > { %v319_v33 = vmul.f32 %v655_v32, %v317_v30 }
  0x71   : > { %v320_v35 = vsub.f32 2.0, %v319_v33 }
  0x73   : > { %v321_v36 = vmul.f32 %v655_v32, %v320_v35 }
  0x75   : > { %v322_v38 = vmul.f32 %v647_v20, %v321_v36  ;;  %v323_v39 = vmul.f32 %v649_v21, %v321_v36  ;;  %v324_v41 = vmul.f32 %v651_v23, %v321_v36  ;;  %v325_v43 = vmul.f32 %v653_v25, %v321_v36 }
  0x77   : > { %v330_v45 = vsel %vm326_vm1, %v322_v38, 0.0  ;;  %v331_v46 = vsel %vm327_vm2, %v323_v39, 0.0  ;;  %v332_v47 = vsel %vm328_vm3, %v324_v41, 0.0  ;;  %v333_v48 = vsel %vm329_vm4, %v325_v43, 0.0 }
  0x78   : > { %v346_v49 = vadd.f32 %v342_v37, %v330_v45  ;;  %v347_v50 = vadd.f32 %v343_v40, %v331_v46  ;;  %v348_v51 = vadd.f32 %v344_v42, %v332_v47  ;;  %v349_v52 = vadd.f32 %v345_v44, %v333_v48 }
  0x79   : > { %v334_v56 = vadd.f32 1.0, %v322_v38  ;;  %v335_v57 = vadd.f32 1.0, %v323_v39  ;;  %v336_v58 = vadd.f32 1.0, %v324_v41  ;;  %v337_v59 = vadd.f32 1.0, %v325_v43 }
  0x7a   : > { %350 = vst [vmem:[%s979_s4] sm:$0x3] %v346_v49  ;;  %351 = vst [vmem:[%s979_s4 + $0x2] sm:$0x3] %v347_v50 }
  0x7b   : > { %352 = vst [vmem:[%s979_s4 + $0x4] sm:$0x3] %v348_v51  ;;  %353 = vst [vmem:[%s979_s4 + $0x6] sm:$0x3] %v349_v52  ;;  %v338_v61 = vsel %vm326_vm1, %v334_v56, %v322_v38  ;;  %v339_v62 = vsel %vm327_vm2, %v335_v57, %v323_v39  ;;  %v340_v63 = vsel %vm328_vm3, %v336_v58, %v324_v41 }
  0x7c   : > { %v341_v0 = vsel %vm329_vm4, %v337_v59, %v325_v43 }
  0x7d   : > { %725 = shalt.err (!%p722_p7)
}
  0x7e   : > { %s726_s29 = scalar_lea.hbm %s1020_s21, 128  ;;  %s730_s4 = scalar_lea.hbm %s1123_s2, 256 }
  0x7f   : > { %p727_p1 = scmp.ne.s32.totalorder %s1020_s21, %s726_s29  ;;  %p731_p3 = scmp.lt.s32.totalorder %s1020_s21, %s1123_s2 }
  0x80   : > { %p732_p8 = scmp.lt.s32.totalorder %s730_s4, %s726_s29 }
  0x81   : > { %p728_p10 = pnand %p727_p1, %p908_p9 }
  0x82   : > { %p733_p0 = por %p732_p8, %p731_p3 }
  0x83   : > { %p729_p13 = pneg %p728_p10 }
  0x85   : > { %p734_p2 = pnand %p733_p0, %p729_p13 }
  0x87   : > { %737 = shalt.err (!%p734_p2)
}
  0x88   : > { %s834_s8 = smov 32   ;;  %s835_s10 = smov 2   ;;  %v358_v1 = vadd.f32 %v354_v53, %v338_v61  ;;  %v359_v2 = vadd.f32 %v355_v54, %v339_v62  ;;  %v360_v3 = vadd.f32 %v356_v55, %v340_v63  ;;  %v361_v4 = vadd.f32 %v357_v60, %v341_v0 }
  0x89   : > { %573 = dma.vmem_to_hbm [thread:$0]  (%p908_p9), %s1022_s7, 128, %s1020_s21, %s367_s6, %s834_s8, %s834_s8, %s835_s10  }
  0x8a   : > { %s1064_s29 = scalar_lea.hbm %s1124_s3, %s567_s24  ;;  %362 = vst [vmem:[%s985_s5] sm:$0x3] %v358_v1  ;;  %363 = vst [vmem:[%s985_s5 + $0x2] sm:$0x3] %v359_v2  ;;  %s372_s7 = scalar_lea.sflag [#allocation9], %s965_s28 }
  0x8b   : > { %364 = vst [vmem:[%s985_s5 + $0x4] sm:$0x3] %v360_v3  ;;  %365 = vst [vmem:[%s985_s5 + $0x6] sm:$0x3] %v361_v4  ;;  %s738_s21 = scalar_lea.vmem %s1068_s11, 128  ;;  %s836_s15 = smov [#allocation8]  }
  0x8c   : > { %p739_p5 = scmp.ne.s32.totalorder %s1068_s11, %s738_s21  ;;  %s742_s6 = sshll.u32 %s836_s15, 4  ;;  %s743_s6 = int_to_ptr.vmem [resolvable:$false] %s742_s6 }
  0x8d   : > { %s744_s24 = scalar_lea.vmem %s743_s6, 256  ;;  %p745_p7 = scmp.lt.s32.totalorder %s1068_s11, %s743_s6 }
  0x8e   : > { %p740_p6 = pnand %p739_p5, %p908_p9  ;;  %p746_p1 = scmp.lt.s32.totalorder %s744_s24, %s738_s21 }
  0x90   : > { %p741_p4 = pneg %p740_p6  ;;  %p747_p10 = por %p746_p1, %p745_p7 }
  0x92   : > { %p748_p13 = pnand %p747_p10, %p741_p4 }
  0x94   : > { %751 = shalt.err (!%p748_p13)
}
  0x95   : > { %s752_s5 = scalar_lea.hbm %s1064_s29, 128  ;;  %s756_s30 = scalar_lea.hbm %s1124_s3, 256 }
  0x96   : > { %p753_p3 = scmp.ne.s32.totalorder %s1064_s29, %s752_s5  ;;  %p757_p2 = scmp.lt.s32.totalorder %s1064_s29, %s1124_s3 }
  0x97   : > { %p758_p5 = scmp.lt.s32.totalorder %s756_s30, %s752_s5 }
  0x98   : > { %p754_p8 = pnand %p753_p3, %p908_p9 }
  0x99   : > { %p759_p6 = por %p758_p5, %p757_p2 }
  0x9a   : > { %p755_p0 = pneg %p754_p8 }
  0x9c   : > { %p760_p4 = pnand %p759_p6, %p755_p0 }
  0x9e   : > { %763 = shalt.err (!%p760_p4)
}
  0x9f   : > { %574 = dma.vmem_to_hbm [thread:$0]  (%p908_p9), %s1068_s11, 128, %s1064_s29, %s372_s7, %s834_s8, %s834_s8, %s835_s10  }
  0xa0 PF: > { %s418_s19 = sand.u32 1, %s806_s12   ;;  %p585_p7 = pnand %p549_p12, %p915_p11 }
  0xa1   : > { %s419_s22 = scalar_lea.sflag [#allocation4], %s418_s19 }
  0xa2   : > { %p586_p1 = pneg %p585_p7 }
  0xa4   : > { %797 = dma.done.wait (%p586_p1), %s419_s22, 128  }
  0xa5   : > { %799 = vsyncadd (%p586_p1), %s419_s22, 4294967168  ;;  %s428_s23 = scalar_lea.sflag [#allocation9], %s418_s19 }
  0xa6   : > { %801 = dma.done.wait (%p586_p1), %s428_s23, 128  }
  0xa7   : > { %803 = vsyncadd (%p586_p1), %s428_s23, 4294967168  ;;  %s26_s17 = sadd.s32 1, %s826_s17   ;;  %s1131_s12 = smov %s810_s13 }
  0xa8   : > { %p23_p10 = scmp.ge.s32.totalorder %s26_s17, 4   ;;  %s1132_s13 = smov %s814_s14 }
  0xa9   : > { %s1133_s14 = smov %s913_s26  ;;  %s1134_s15 = smov %s822_s16 }
  0xaa   : > { %s1135_s16 = smov %s1137_s20  ;;  %25 = sbr.rel (!%p23_p10) target bundleno = 10 (0xa), region = 107 }
  0xaf   :  { %433 = vsyncpa [#allocation3], 1 }
  0xb0   :  { %435 = vsyncpa [#allocation3 + $0x1], 1 }
  0xb1   :  { %436 = vsyncpa [#allocation6], 1 }
  0xb2   :  { %438 = vsyncpa [#allocation6 + $0x1], 1 }
  0xb3   :  { %439 = vsyncpa [#allocation4], 1 }
  0xb4   :  { %441 = vsyncpa [#allocation4 + $0x1], 1 }
  0xb5   :  { %442 = vsyncpa [#allocation9], 1 }
  0xb6   :  { %444 = vsyncpa [#allocation9 + $0x1], 1 }

</bundles_post_ra>
